<compile_context>
chip_gen: v7x
topology: tpu7x:2x2x1
jax: 0.10.0
libtpu: 0.0.40
codegen_flags: <defaults>
</compile_context>

<pallas_src>
import jax
import jax.numpy as jnp
from jax.experimental import pallas as pl
from jax.experimental.pallas import tpu as pltpu


def _round_up(n, m):
    return ((n + m - 1) // m) * m


def _glove_kernel(x_ref, w1_ref, b1_ref, w2_ref, b2_ref, out_ref):
    # fc1 in transposed orientation: contract (H, D) with (TILE_B, D) over D so
    # the (H, TILE_B) result puts the batch on the lane axis (lane-dense store).
    # bf16 cast happens here on the VPU (HBM stream stays raw f32); the MXU
    # accumulates in f32.
    x_bf = x_ref[...].astype(jnp.bfloat16)
    w1_bf = w1_ref[...].astype(jnp.bfloat16)
    h = jax.lax.dot_general(
        w1_bf, x_bf,
        dimension_numbers=(((1,), (1,)), ((), ())),
        preferred_element_type=jnp.float32)               # (H, TILE_B) f32
    h = jnp.maximum(h + b1_ref[...], 0.0)                 # bias + ReLU (VPU, f32)
    # Dropout(p=0.3): PyTorch eval mode -> identity.
    # fc2 ([*,128] @ [128,1]) as VPU multiply + sublane reduction (no N=1 MXU op).
    y = jnp.sum(h * w2_ref[...], axis=0, keepdims=True)   # (1, TILE_B) f32
    y = y + b2_ref[0, 0]                                   # scalar bias from SMEM
    # Sigmoid: EUP exp + exact EUP reciprocal (approx=False for torch fidelity).
    out_ref[...] = pl.reciprocal(1.0 + jnp.exp(-y), approx=False).astype(out_ref.dtype)


def glove_trigger_forward(x, w1, b1, w2, b2, *, tile_b=4096):
    """Forward pass of GloveTriggerModel (eval mode).

    x : [B, D] float32
    w1: [128, D] (PyTorch layout [out, in]),  b1: [128]
    w2: [1, 128] (PyTorch layout),            b2: [1]
    Returns sigmoid output of shape [B, 1] float32.
    """
    B, D = x.shape
    H = w1.shape[0]

    # --- batch tiling: x is streamed raw (no wrapper pad/cast pass) ---------
    if B >= 128:
        tile_b = min(int(tile_b), _round_up(B, 128))
        if B >= 2 * 128:
            # Keep >= 2 tiles so both v7x TensorCores get work; keep it a
            # multiple of 128 for lane-dense output blocks.
            tile_b = min(tile_b, _round_up(pl.cdiv(B, 2), 128))
        tile_b = max(128, (tile_b // 128) * 128)
    else:
        tile_b = _round_up(B, 8)          # tiny batch: one full-extent block
    num_tiles = pl.cdiv(B, tile_b)

    b1_c = b1.reshape(H, 1).astype(jnp.float32)
    w2_c = w2.reshape(H, 1).astype(jnp.float32)
    b2_c = b2.reshape(1, 1).astype(jnp.float32)

    out = pl.pallas_call(
        _glove_kernel,
        out_shape=jax.ShapeDtypeStruct((1, num_tiles * tile_b), jnp.float32),
        grid=(num_tiles,),
        in_specs=[
            pl.BlockSpec((tile_b, D), lambda i: (i, 0)),        # x: raw f32, full-K block
            pl.BlockSpec((H, D), lambda i: (0, 0)),             # w1: resident
            pl.BlockSpec((H, 1), lambda i: (0, 0)),             # b1: resident
            pl.BlockSpec((H, 1), lambda i: (0, 0)),             # w2: resident
            pl.BlockSpec(memory_space=pltpu.MemorySpace.SMEM),  # b2: scalar in SMEM
        ],
        out_specs=pl.BlockSpec((1, tile_b), lambda i: (0, i)),  # lane-dense slab
        compiler_params=pltpu.CompilerParams(
            dimension_semantics=("parallel",),      # shard batch across TCs (v7x)
            vmem_limit_bytes=32 * 1024 * 1024),     # explicit (v5e default is 16 MiB)
    )(x.astype(jnp.float32), w1.astype(jnp.float32), b1_c, w2_c, b2_c)

    # Wrapper-side layout plumbing back to the PyTorch [B, 1] shape.
    return out[0, :B].reshape(B, 1)


def init_params(key, input_dim=100, hidden=128):
    """PyTorch-layout params, Linear default init U[-1/sqrt(fan_in), +1/sqrt(fan_in)]."""
    k1, k2, k3, k4 = jax.random.split(key, 4)
    lim1 = 1.0 / jnp.sqrt(input_dim)
    lim2 = 1.0 / jnp.sqrt(hidden)
    w1 = jax.random.uniform(k1, (hidden, input_dim), jnp.float32, -lim1, lim1)
    b1 = jax.random.uniform(k2, (hidden,), jnp.float32, -lim1, lim1)
    w2 = jax.random.uniform(k3, (1, hidden), jnp.float32, -lim2, lim2)
    b2 = jax.random.uniform(k4, (1,), jnp.float32, -lim2, lim2)
    return w1, b1, w2, b2


if __name__ == "__main__":
    key = jax.random.PRNGKey(0)
    kx, kp = jax.random.split(key)

    B, INPUT_DIM = 8, 100
    x = jax.random.normal(kx, (B, INPUT_DIM), jnp.float32)
    w1, b1, w2, b2 = init_params(kp, input_dim=INPUT_DIM, hidden=128)

    out = glove_trigger_forward(x, w1, b1, w2, b2)
    out = jax.block_until_ready(out)
    assert out.shape == (B, 1)

    # Reference matching the kernel's precision choice (bf16 MXU operands,
    # f32 accumulation, eval-mode dropout = identity).
    h_bf = jnp.dot(x.astype(jnp.bfloat16), w1.T.astype(jnp.bfloat16),
                   preferred_element_type=jnp.float32)
    ref_bf = jax.nn.sigmoid(jnp.maximum(h_bf + b1, 0.0) @ w2.T + b2)
    assert jnp.allclose(out, ref_bf, atol=2e-3, rtol=2e-3), "mismatch vs bf16-matched reference"

    # Documented drift bound vs the true f32 PyTorch model (fc1 operands are
    # cast to bf16 on the MXU; everything else is f32).
    ref_f32 = jax.nn.sigmoid(jnp.maximum(x @ w1.T + b1, 0.0) @ w2.T + b2)
    assert jnp.allclose(out, ref_f32, atol=1e-2, rtol=1e-2), "drift vs f32 reference too large"

    print("KERNEL_OK")
</pallas_src>

<mosaic_0001>
module attributes {stable_mosaic.version = 11 : i64} {
  func.func @_glove_kernel(%arg0: i32, %arg1: memref<8x100xf32, #tpu.memory_space<vmem>>, %arg2: memref<128x100xf32, #tpu.memory_space<vmem>>, %arg3: memref<128x1xf32, #tpu.memory_space<vmem>>, %arg4: memref<128x1xf32, #tpu.memory_space<vmem>>, %arg5: memref<1x1xf32, #tpu.memory_space<smem>>, %arg6: memref<1x8xf32, #tpu.memory_space<vmem>>) attributes {dimension_semantics = [#tpu.dimension_semantics<parallel>], iteration_bounds = array<i64: 1>, scalar_prefetch = 0 : i64, scratch_operands = 0 : i64, tpu.core_type = #tpu.core_type<tc>, window_params = [{transform_indices = @transform_0, window_bounds = array<i64: 8, 100>}, {pipeline_mode = #tpu.pipeline_mode<synchronous>, transform_indices = @transform_1, window_bounds = array<i64: 128, 100>}, {pipeline_mode = #tpu.pipeline_mode<synchronous>, transform_indices = @transform_2, window_bounds = array<i64: 128, 1>}, {pipeline_mode = #tpu.pipeline_mode<synchronous>, transform_indices = @transform_3, window_bounds = array<i64: 128, 1>}, {transform_indices = @transform_4, window_bounds = array<i64: 1, 1>}, {transform_indices = @transform_5, window_bounds = array<i64: 1, 8>}]} {
    %c0 = arith.constant 0 : index
    %c0_0 = arith.constant 0 : index
    %0 = vector.load %arg1[%c0, %c0_0] : memref<8x100xf32, #tpu.memory_space<vmem>>, vector<8x100xf32>
    %1 = arith.truncf %0 : vector<8x100xf32> to vector<8x100xbf16>
    %c0_1 = arith.constant 0 : index
    %c0_2 = arith.constant 0 : index
    %2 = vector.load %arg2[%c0_1, %c0_2] : memref<128x100xf32, #tpu.memory_space<vmem>>, vector<128x100xf32>
    %3 = arith.truncf %2 : vector<128x100xf32> to vector<128x100xbf16>
    %cst = arith.constant dense<0.000000e+00> : vector<128x8xf32>
    %4 = tpu.matmul %3, %1, %cst {dimension_numbers = #tpu.dot_dimension_numbers<[1], [1], [0], [0], [0, 0, 1, 0], [], []>} : vector<128x100xbf16>, vector<8x100xbf16>, vector<128x8xf32> -> vector<128x8xf32>
    %c0_3 = arith.constant 0 : index
    %c0_4 = arith.constant 0 : index
    %5 = vector.load %arg3[%c0_3, %c0_4] : memref<128x1xf32, #tpu.memory_space<vmem>>, vector<128x1xf32>
    %6 = vector.broadcast %5 : vector<128x1xf32> to vector<128x8xf32>
    %7 = arith.addf %4, %6 : vector<128x8xf32>
    %cst_5 = arith.constant 0.000000e+00 : f32
    %8 = vector.broadcast %cst_5 : f32 to vector<128x8xf32>
    %9 = arith.maximumf %7, %8 : vector<128x8xf32>
    %c0_6 = arith.constant 0 : index
    %c0_7 = arith.constant 0 : index
    %10 = vector.load %arg4[%c0_6, %c0_7] : memref<128x1xf32, #tpu.memory_space<vmem>>, vector<128x1xf32>
    %11 = vector.broadcast %10 : vector<128x1xf32> to vector<128x8xf32>
    %12 = arith.mulf %9, %11 : vector<128x8xf32>
    %cst_8 = arith.constant dense<0.000000e+00> : vector<8xf32>
    %13 = vector.multi_reduction <add>, %12, %cst_8 [0] : vector<128x8xf32> to vector<8xf32>
    %14 = vector.shape_cast %13 : vector<8xf32> to vector<1x8xf32>
    %c0_9 = arith.constant 0 : index
    %c0_10 = arith.constant 0 : index
    %15 = memref.load %arg5[%c0_9, %c0_10] : memref<1x1xf32, #tpu.memory_space<smem>>
    %16 = vector.broadcast %15 : f32 to vector<1x8xf32>
    %17 = arith.addf %14, %16 : vector<1x8xf32>
    %cst_11 = arith.constant 0.000000e+00 : f32
    %18 = vector.broadcast %cst_11 : f32 to vector<1x8xf32>
    %19 = arith.subf %18, %17 : vector<1x8xf32>
    %20 = math.exp %19 : vector<1x8xf32>
    %cst_12 = arith.constant 1.000000e+00 : f32
    %21 = vector.broadcast %cst_12 : f32 to vector<1x8xf32>
    %22 = arith.addf %21, %20 : vector<1x8xf32>
    %23 = tpu.reciprocal %22 : vector<1x8xf32> -> vector<1x8xf32>
    %c0_13 = arith.constant 0 : index
    %c0_14 = arith.constant 0 : index
    %24 = vector.load %arg6[%c0_13, %c0_14] : memref<1x8xf32, #tpu.memory_space<vmem>>, vector<1x8xf32>
    tpu.vector_store %arg6[%c0_13, %c0_14], %23 {strides = array<i32>} : memref<1x8xf32, #tpu.memory_space<vmem>>, vector<1x8xf32>,
    return
  }
  func.func @transform_0(%arg0: i32) -> (i32, i32) {
    %c0_i32 = arith.constant 0 : i32
    %c0_i32_0 = arith.constant 0 : i32
    return %arg0, %c0_i32 : i32, i32
  }
  func.func @transform_1(%arg0: i32) -> (i32, i32) {
    %c0_i32 = arith.constant 0 : i32
    %c0_i32_0 = arith.constant 0 : i32
    %c0_i32_1 = arith.constant 0 : i32
    return %c0_i32, %c0_i32_0 : i32, i32
  }
  func.func @transform_2(%arg0: i32) -> (i32, i32) {
    %c0_i32 = arith.constant 0 : i32
    %c0_i32_0 = arith.constant 0 : i32
    %c0_i32_1 = arith.constant 0 : i32
    return %c0_i32, %c0_i32_0 : i32, i32
  }
  func.func @transform_3(%arg0: i32) -> (i32, i32) {
    %c0_i32 = arith.constant 0 : i32
    %c0_i32_0 = arith.constant 0 : i32
    %c0_i32_1 = arith.constant 0 : i32
    return %c0_i32, %c0_i32_0 : i32, i32
  }
  func.func @transform_4(%arg0: i32) -> (i32, i32) {
    %c0_i32 = arith.constant 0 : i32
    %c0_i32_0 = arith.constant 0 : i32
    %c0_i32_1 = arith.constant 0 : i32
    return %c0_i32, %c0_i32_0 : i32, i32
  }
  func.func @transform_5(%arg0: i32) -> (i32, i32) {
    %c0_i32 = arith.constant 0 : i32
    %c0_i32_0 = arith.constant 0 : i32
    return %c0_i32, %arg0 : i32, i32
  }
}

</mosaic_0001>

<bundles_post_ra>
// kernel: tpu_custom_call.1
= control target key start
LH: loop header
LB: loop body
LE: loop exit
PB: predicated region body
PF: predicated region fallthrough
CT: control target
= control target key end

     0   :  { %vm145_vm0 = vcmask 818176   ;;  %v531_v4 = vmov 0   ;;  %s764_s0 = inlined_call_operand.vmem [shape: f32[8,100], index: 0, kind: input, shape index: {}]   ;;  %s765_s1 = inlined_call_operand.vmem [shape: f32[128,100], index: 1, kind: input, shape index: {}]   ;;  %s766_s2 = inlined_call_operand.vmem [shape: f32[128,1], index: 2, kind: input, shape index: {}]   ;;  %s767_s3 = inlined_call_operand.vmem [shape: f32[128,1], index: 3, kind: input, shape index: {}]   ;;  %s768_s4 = inlined_call_operand.<no memory space> [shape: f32[1,1], index: 4, kind: input, shape index: {}]   ;;  %s769_s5 = inlined_call_operand.hbm [shape: f32[1,8], index: 5, kind: output, shape index: {}]  }
   0x1   :  { %v23_v0 = vld [vmem:[%s764_s0] sm:$0xff]  ;;  %v51_v2 = vld [vmem:[%s766_s2 + $0x10] sm:$0xff]  ;;  %501 = vset.pattern.permute.xlu0 %v531_v4  ;;  %502 = vset.pattern.permute.xlu1 %v531_v4  ;;  %v26_v6 = vld [vmem:[%s765_s1 + $0x8] sm:$0xff] }
   0x2   :  { %v49_v1 = vld [vmem:[%s766_s2] sm:$0xff]  ;;  %v24_v3 = vpack.c.bf16 %v23_v0, %v23_v0  ;;  %77 = vperm.xlu1 %502, %v51_v2   ;;  %v34_v9 = vld [vmem:[%s765_s1 + $0x48] sm:$0xff]  ;;  %v27_v12 = vld [vmem:[%s765_s1 + $0x10] sm:$0xff] }
   0x3   :  { %v25_v5 = vld [vmem:[%s765_s1] sm:$0xff]  ;;  %67 = vperm.xlu0 %501, %v49_v1   ;;  %v28_v13 = vld [vmem:[%s765_s1 + $0x18] sm:$0xff]  ;;  %v50_v14 = vld [vmem:[%s766_s2 + $0x8] sm:$0xff] }
   0x4   :  { %v33_v7 = vld [vmem:[%s765_s1 + $0x40] sm:$0xff]  ;;  %v41_v8 = vpack.c.bf16 %v26_v6, %v25_v5  ;;  %497 = vmatprep.subr.msk.bf16.mxu0 %vm145_vm0, %v24_v3  ;;  %498 = vmatprep.subr.msk.bf16.mxu1 %vm145_vm0, %v24_v3  ;;  %v171_v10 = vsel %vm145_vm0, %v24_v3, 0  ;;  %v35_v15 = vld [vmem:[%s765_s1 + $0x50] sm:$0xff]  ;;  %v36_v16 = vld [vmem:[%s765_s1 + $0x58] sm:$0xff]  ;;  %v42_v22 = vpack.c.bf16 %v28_v13, %v27_v12 }
   0x5   :  { %v45_v11 = vpack.c.bf16 %v34_v9, %v33_v7  ;;  %478 = vmatpush3.bf16.xpose.msra.mxu0 %v171_v10  ;;  %496 = vmatpush3.bf16.xpose.msra.mxu1 %v171_v10  ;;  %v52_v17 = vld [vmem:[%s766_s2 + $0x18] sm:$0xff]  ;;  %v29_v18 = vld [vmem:[%s765_s1 + $0x20] sm:$0xff]  ;;  %v30_v19 = vld [vmem:[%s765_s1 + $0x28] sm:$0xff]  ;;  %v46_v23 = vpack.c.bf16 %v36_v16, %v35_v15 }
   0x6   :  { %479 = vmatprep.mubr.msk.bf16.mxu0 %vm145_vm0, %v41_v8  ;;  %v37_v20 = vld [vmem:[%s765_s1 + $0x60] sm:$0xff]  ;;  %82 = vperm.xlu1 %502, %v52_v17   ;;  %v38_v21 = vld [vmem:[%s765_s1 + $0x68] sm:$0xff]  ;;  %v43_v26 = vpack.c.bf16 %v30_v19, %v29_v18  ;;  %v31_v28 = vld [vmem:[%s765_s1 + $0x30] sm:$0xff] }
   0x7   :  { %487 = vmatprep.mubr.msk.bf16.mxu1 %vm145_vm0, %v45_v11  ;;  %72 = vperm.xlu0 %501, %v50_v14   ;;  %v286_v24 = vld [vmem:[%s767_s3] sm:$0xff]  ;;  %v287_v25 = vld [vmem:[%s767_s3 + $0x8] sm:$0xff]  ;;  %v47_v27 = vpack.c.bf16 %v38_v21, %v37_v20  ;;  %v288_v30 = vld [vmem:[%s767_s3 + $0x10] sm:$0xff] }
   0x8   :  { %v53_v29 = vld [vmem:[%s766_s2 + $0x20] sm:$0xff]  ;;  %v32_v31 = vld [vmem:[%s765_s1 + $0x38] sm:$0xff]  ;;  %v39_v32 = vld [vmem:[%s765_s1 + $0x70] sm:$0xff] }
   0x9   :  { %v40_v33 = vld [vmem:[%s765_s1 + $0x78] sm:$0xff]  ;;  %v44_v34 = vpack.c.bf16 %v32_v31, %v31_v28  ;;  %v54_v36 = vld [vmem:[%s766_s2 + $0x28] sm:$0xff] }
   0xa   :  { %309 = vperm.xlu1 %502, %v287_v25   ;;  %v48_v35 = vpack.c.bf16 %v40_v33, %v39_v32  ;;  %v289_v37 = vld [vmem:[%s767_s3 + $0x18] sm:$0xff] }
   0xb   :  { %304 = vperm.xlu0 %501, %v286_v24  }
   0xc   :  { %480 = vmatmul.mubr.msk.bf16.vlgmr.msra.gmra.mrb[0].mxu0 %vm145_vm0, %v42_v22  ;;  %488 = vmatmul.mubr.msk.bf16.vlgmr.msra.gmra.mrb[0].mxu1 %vm145_vm0, %v46_v23 }
   0xd   :  { %483 = vmatprep.mubr.msk.bf16.mxu0 %vm145_vm0, %v43_v26  ;;  %491 = vmatprep.mubr.msk.bf16.mxu1 %vm145_vm0, %v47_v27 }
   0xe   :  { %314 = vperm.xlu1 %502, %v288_v30  }
   0xf   :  { %87 = vperm.xlu0 %501, %v53_v29  }
  0x10   :  { %11 = vsyncpa [#allocation4], 0  ;;  %v55_v38 = vld [vmem:[%s766_s2 + $0x30] sm:$0xff]  ;;  %v290_v39 = vld [vmem:[%s767_s3 + $0x20] sm:$0xff]  ;;  %vm398_vm1 = vcmask 64512   ;;  %s532_s10 = smov [#allocation3]  }
  0x11   :  { %v56_v40 = vld [vmem:[%s766_s2 + $0x38] sm:$0xff]  ;;  %v291_v41 = vld [vmem:[%s767_s3 + $0x28] sm:$0xff]  ;;  %v57_v42 = vld [vmem:[%s766_s2 + $0x40] sm:$0xff]  ;;  %s452_s11 = sshll.u32 %s532_s10, 4  ;;  %vm444_vm2 = vcmask 57344   ;;  %s453_s11 = int_to_ptr.vmem [resolvable:$true] %s452_s11 }
  0x12   :  { %319 = vperm.xlu1 %502, %v289_v37   ;;  %v292_v43 = vld [vmem:[%s767_s3 + $0x30] sm:$0xff]  ;;  %v58_v44 = vld [vmem:[%s766_s2 + $0x48] sm:$0xff]  ;;  %v293_v45 = vld [vmem:[%s767_s3 + $0x38] sm:$0xff]  ;;  %s507_s12 = scalar_lea.vmem %s453_s11, 16  ;;  %s511_s13 = scalar_lea.vmem %s453_s11, 32 }
  0x13   :  { %92 = vperm.xlu0 %501, %v54_v36   ;;  %v59_v46 = vld [vmem:[%s766_s2 + $0x50] sm:$0xff]  ;;  %v294_v47 = vld [vmem:[%s767_s3 + $0x40] sm:$0xff]  ;;  %v60_v48 = vld [vmem:[%s766_s2 + $0x58] sm:$0xff]  ;;  %p508_p0 = scmp.ne.s32.totalorder %s453_s11, %s507_s12  ;;  %p512_p1 = scmp.lt.s32.totalorder %s453_s11, %s453_s11 }
  0x14   :  { %484 = vmatmul.mubr.msk.bf16.gmra.mrb[4].mxu0 %vm145_vm0, %v44_v34  ;;  %492 = vmatmul.mubr.msk.bf16.gmra.mrb[4].mxu1 %vm145_vm0, %v48_v35  ;;  %v295_v49 = vld [vmem:[%s767_s3 + $0x48] sm:$0xff]  ;;  %v61_v50 = vld [vmem:[%s766_s2 + $0x60] sm:$0xff]  ;;  %v296_v51 = vld [vmem:[%s767_s3 + $0x50] sm:$0xff]  ;;  %p513_p2 = scmp.lt.s32.totalorder %s511_s13, %s507_s12 }
  0x15   :  { %v62_v52 = vld [vmem:[%s766_s2 + $0x68] sm:$0xff]  ;;  %v297_v53 = vld [vmem:[%s767_s3 + $0x58] sm:$0xff]  ;;  %v63_v54 = vld [vmem:[%s766_s2 + $0x70] sm:$0xff] }
  0x16   :  { %324 = vperm.xlu1 %502, %v290_v39   ;;  %v298_v55 = vld [vmem:[%s767_s3 + $0x60] sm:$0xff]  ;;  %v64_v56 = vld [vmem:[%s766_s2 + $0x78] sm:$0xff]  ;;  %v299_v57 = vld [vmem:[%s767_s3 + $0x68] sm:$0xff]  ;;  %p514_p3 = por %p513_p2, %p512_p1 }
  0x17   :  { %97 = vperm.xlu0 %501, %v55_v38   ;;  %v300_v58 = vld [vmem:[%s767_s3 + $0x70] sm:$0xff]  ;;  %v301_v59 = vld [vmem:[%s767_s3 + $0x78] sm:$0xff] }
  0x18   :  { %p515_p4 = pnand %p514_p3, %p508_p0 }
  0x1a   :  { %329 = vperm.xlu1 %502, %v291_v41  }
  0x1b   :  { %102 = vperm.xlu0 %501, %v56_v40  }
  0x1e   :  { %334 = vperm.xlu1 %502, %v292_v43  }
  0x1f   :  { %107 = vperm.xlu0 %501, %v57_v42  }
  0x22   :  { %339 = vperm.xlu1 %502, %v293_v45  }
  0x23   :  { %112 = vperm.xlu0 %501, %v58_v44  }
  0x26   :  { %344 = vperm.xlu1 %502, %v294_v47  }
  0x27   :  { %117 = vperm.xlu0 %501, %v59_v46  }
  0x2a   :  { %349 = vperm.xlu1 %502, %v295_v49  }
  0x2b   :  { %122 = vperm.xlu0 %501, %v60_v48  }
  0x2e   :  { %354 = vperm.xlu1 %502, %v296_v51  }
  0x2f   :  { %127 = vperm.xlu0 %501, %v61_v50  }
  0x32   :  { %359 = vperm.xlu1 %502, %v297_v53  }
  0x33   :  { %132 = vperm.xlu0 %501, %v62_v52  }
  0x36   :  { %364 = vperm.xlu1 %502, %v298_v55  }
  0x37   :  { %137 = vperm.xlu0 %501, %v63_v54  }
  0x3a   :  { %369 = vperm.xlu1 %502, %v299_v57  }
  0x3b   :  { %142 = vperm.xlu0 %501, %v64_v56  }
  0x3e   :  { %379 = vperm.xlu1 %502, %v301_v59  }
  0x3f   :  { %374 = vperm.xlu0 %501, %v300_v58  }
  0x81   :  { %v78_v61 = vpop.permute.xlu1 %77 }
  0x82   :  { %v68_v60 = vpop.permute.xlu0 %67 }
  0x85   :  { %v83_v63 = vpop.permute.xlu1 %82 }
  0x86   :  { %v73_v62 = vpop.permute.xlu0 %72 }
  0x89   :  { %v310_v1 = vpop.permute.xlu1 %309 }
  0x8a   :  { %v305_v0 = vpop.permute.xlu0 %304 }
  0x8d   :  { %v315_v3 = vpop.permute.xlu1 %314 }
  0x8e   :  { %v88_v2 = vpop.permute.xlu0 %87 }
  0x91   :  { %v320_v5 = vpop.permute.xlu1 %319 }
  0x92   :  { %v93_v4 = vpop.permute.xlu0 %92 }
  0x95   :  { %v325_v7 = vpop.permute.xlu1 %324 }
  0x96   :  { %v98_v6 = vpop.permute.xlu0 %97 }
  0x99   :  { %v721_v9 = vpop.permute.xlu1 %329 }
  0x9a   :  { %v103_v8 = vpop.permute.xlu0 %102 }
  0x9d   :  { %v335_v11 = vpop.permute.xlu1 %334 }
  0x9e   :  { %v108_v10 = vpop.permute.xlu0 %107 }
  0xa1   :  { %v723_v13 = vpop.permute.xlu1 %339 }
  0xa2   :  { %v113_v12 = vpop.permute.xlu0 %112 }
  0xa5   :  { %v725_v15 = vpop.permute.xlu1 %344 }
  0xa6   :  { %v118_v14 = vpop.permute.xlu0 %117 }
  0xa9   :  { %v727_v17 = vpop.permute.xlu1 %349 }
  0xaa   :  { %v123_v16 = vpop.permute.xlu0 %122 }
  0xad   :  { %v355_v36 = vpop.permute.xlu1 %354 }
  0xae   :  { %v128_v35 = vpop.permute.xlu0 %127 }
  0xb2   :  { %v133_v59 = vpop.permute.xlu0 %132 }
  0xdf   :  { %v481_v18 = vpop.f32.mrb[0].mxu0  ;;  %v489_v19 = vpop.f32.mrb[0].mxu1 }
  0xe0   :  { %v216_v20 = vadd.f32 %v481_v18, %v78_v61  ;;  %v207_v21 = vpop.f32.mrb[1].mxu0  ;;  %v239_v22 = vpop.f32.mrb[1].mxu1 }
  0xe1   :  { %v208_v23 = vadd.f32 %v207_v21, %v68_v60  ;;  %v482_v24 = vpop.f32.mrb[2].mxu0  ;;  %v490_v25 = vpop.f32.mrb[2].mxu1  ;;  %v240_v50 = vadd.f32 %v239_v22, %v108_v10 }
  0xe2   :  { %v219_v26 = vadd.f32 %v482_v24, %v83_v63  ;;  %v210_v27 = vpop.f32.mrb[3].mxu0  ;;  %v242_v28 = vpop.f32.mrb[3].mxu1  ;;  %v272_v29 = vmax.f32 %v216_v20, 0.0  ;;  %v251_v21 = vadd.f32 %v490_v25, %v123_v16 }
  0xe3   :  { %v270_v30 = vmax.f32 %v208_v23, 0.0  ;;  %v211_v31 = vadd.f32 %v210_v27, %v73_v62  ;;  %v243_v61 = vadd.f32 %v242_v28, %v113_v12  ;;  %v138_v23 = vpop.permute.xlu0 %137 }
  0xe4   :  { %v273_v33 = vmax.f32 %v219_v26, 0.0  ;;  %v384_v37 = vmul.f32 %v315_v3, %v272_v29  ;;  %v248_v3 = vadd.f32 %v489_v19, %v118_v14  ;;  %v281_v28 = vmax.f32 %v251_v21, 0.0 }
  0xe5   :  { %v382_v32 = vmul.f32 %v305_v0, %v270_v30  ;;  %v271_v34 = vmax.f32 %v211_v31, 0.0 }
  0xe6   :  { %v385_v45 = vmul.f32 %v320_v5, %v273_v33  ;;  %v402_v55 = vsel %vm398_vm1, %v384_v37, 0.0  ;;  %v280_v24 = vmax.f32 %v248_v3, 0.0 }
  0xe7   :  { %v383_v38 = vmul.f32 %v310_v1, %v271_v34  ;;  %v485_v39 = vpop.f32.mrb[4].mxu0  ;;  %v493_v40 = vpop.f32.mrb[4].mxu1  ;;  %v399_v44 = vsel %vm398_vm1, %v382_v32, 0.0 }
  0xe8   :  { %v232_v41 = vadd.f32 %v485_v39, %v98_v6  ;;  %v223_v42 = vpop.f32.mrb[5].mxu0  ;;  %v255_v43 = vpop.f32.mrb[5].mxu1  ;;  %v404_v62 = vsel %vm398_vm1, %v385_v45, 0.0  ;;  %v278_v6 = vmax.f32 %v240_v50, 0.0  ;;  %v264_v31 = vadd.f32 %v493_v40, %v138_v23 }
  0xe9   :  { %v400_v46 = vsel %vm398_vm1, %v383_v38, 0.0  ;;  %v224_v47 = vadd.f32 %v223_v42, %v88_v2  ;;  %v486_v48 = vpop.f32.mrb[6].mxu0  ;;  %v494_v49 = vpop.f32.mrb[6].mxu1  ;;  %v256_v19 = vadd.f32 %v255_v43, %v128_v35 }
  0xea   :  { %v401_v51 = vadd.f32 %v400_v46, %v399_v44  ;;  %v235_v52 = vadd.f32 %v486_v48, %v103_v8  ;;  %v226_v53 = vpop.f32.mrb[7].mxu0  ;;  %v258_v54 = vpop.f32.mrb[7].mxu1  ;;  %v276_v56 = vmax.f32 %v232_v41, 0.0  ;;  %v390_v26 = vmul.f32 %v725_v15, %v278_v6 }
  0xeb   :  { %v274_v57 = vmax.f32 %v224_v47, 0.0  ;;  %v227_v58 = vadd.f32 %v226_v53, %v93_v4  ;;  %v360_v2 = vpop.permute.xlu1 %359  ;;  %v279_v4 = vmax.f32 %v243_v61, 0.0  ;;  %v259_v25 = vadd.f32 %v258_v54, %v133_v59  ;;  %v143_v33 = vpop.permute.xlu0 %142 }
  0xec   :  { %v403_v60 = vadd.f32 %v402_v55, %v401_v51  ;;  %v277_v0 = vmax.f32 %v235_v52, 0.0  ;;  %v388_v8 = vmul.f32 %v335_v11, %v276_v56  ;;  %v414_v30 = vsel %vm398_vm1, %v390_v26, 0.0 }
  0xed   :  { %v386_v63 = vmul.f32 %v325_v7, %v274_v57  ;;  %v275_v1 = vmax.f32 %v227_v58, 0.0  ;;  %v282_v32 = vmax.f32 %v256_v19, 0.0  ;;  %v393_v15 = vmul.f32 %v360_v2, %v281_v28 }
  0xee   :  { %v405_v5 = vadd.f32 %v404_v62, %v403_v60  ;;  %v389_v22 = vmul.f32 %v723_v13, %v277_v0  ;;  %v410_v14 = vsel %vm398_vm1, %v388_v8, 0.0  ;;  %v392_v13 = vmul.f32 %v355_v36, %v280_v24 }
  0xef   :  { %v406_v10 = vsel %vm398_vm1, %v386_v63, 0.0  ;;  %v387_v18 = vmul.f32 %v721_v9, %v275_v1  ;;  %v365_v11 = vpop.permute.xlu1 %364  ;;  %v391_v9 = vmul.f32 %v727_v17, %v279_v4  ;;  %v267_v35 = vadd.f32 %v494_v49, %v143_v33  ;;  %v375_v40 = vpop.permute.xlu0 %374 }
  0xf0   :  { %v407_v20 = vadd.f32 %v406_v10, %v405_v5  ;;  %v412_v16 = vsel %vm398_vm1, %v389_v22, 0.0  ;;  %v283_v38 = vmax.f32 %v259_v25, 0.0  ;;  %v418_v17 = vsel %vm398_vm1, %v392_v13, 0.0 }
  0xf1   :  { %v408_v12 = vsel %vm398_vm1, %v387_v18, 0.0  ;;  %v416_v37 = vsel %vm398_vm1, %v391_v9, 0.0  ;;  %v284_v42 = vmax.f32 %v264_v31, 0.0  ;;  %v394_v43 = vmul.f32 %v365_v11, %v282_v32 }
  0xf2   :  { %v409_v7 = vadd.f32 %v408_v12, %v407_v20  ;;  %v420_v36 = vsel %vm398_vm1, %v393_v15, 0.0  ;;  %v285_v45 = vmax.f32 %v267_v35, 0.0  ;;  %v437_v0 = vstv %s768_s4 }
  0xf3   :  { %v370_v39 = vpop.permute.xlu1 %369  ;;  %v396_v48 = vmul.f32 %v375_v40, %v284_v42  ;;  %v422_v50 = vsel %vm398_vm1, %v394_v43, 0.0 }
  0xf4   :  { %v411_v27 = vadd.f32 %v410_v14, %v409_v7  ;;  %v395_v46 = vmul.f32 %v370_v39, %v283_v38 }
  0xf5   :  { %v426_v55 = vsel %vm398_vm1, %v396_v48, 0.0 }
  0xf6   :  { %v413_v29 = vadd.f32 %v412_v16, %v411_v27  ;;  %v424_v53 = vsel %vm398_vm1, %v395_v46, 0.0 }
  0xf7   :  { %v380_v51 = vpop.permute.xlu1 %379 }
  0xf8   :  { %v415_v34 = vadd.f32 %v414_v30, %v413_v29  ;;  %v397_v49 = vmul.f32 %v380_v51, %v285_v45 }
  0xfa   :  { %v417_v41 = vadd.f32 %v416_v37, %v415_v34  ;;  %v428_v57 = vsel %vm398_vm1, %v397_v49, 0.0 }
  0xfc   :  { %v419_v44 = vadd.f32 %v418_v17, %v417_v41 }
  0xfe   :  { %v421_v47 = vadd.f32 %v420_v36, %v419_v44 }
 0x100   :  { %v423_v52 = vadd.f32 %v422_v50, %v421_v47 }
 0x102   :  { %v425_v54 = vadd.f32 %v424_v53, %v423_v52 }
 0x104   :  { %v427_v56 = vadd.f32 %v426_v55, %v425_v54 }
 0x106   :  { %v429_v58 = vadd.f32 %v428_v57, %v427_v56 }
 0x108   :  { %v430_v59 = vrot.slane %v429_v58, 4 }
 0x10a   :  { %v431_v60 = vadd.f32 %v430_v59, %v429_v58 }
 0x10c   :  { %v432_v61 = vrot.slane %v431_v60, 2 }
 0x10e   :  { %v433_v62 = vadd.f32 %v432_v61, %v431_v60 }
 0x110   :  { %v434_v63 = vrot.slane %v433_v62, 1 }
 0x112   :  { %v435_v1 = vadd.f32 %v434_v63, %v433_v62 }
 0x114   :  { %v438_v2 = vadd.f32 %v437_v0, %v435_v1 }
 0x116   :  { %v439_v3 = vsub.f32 0.0, %v438_v2 }
 0x118   :  { %v440_v5 = vmul.f32 1.442695, %v439_v3 }
 0x11a   :  { %503 = vpow2.f32 %v440_v5 }
 0x124   :  { %v504_v6 = vpop.eup %503 }
 0x125   :  { %v442_v8 = vadd.f32 1.0, %v504_v6 }
 0x127   :  { %505 = vrcp.f32 %v442_v8 }
 0x131   :  { %v506_v10 = vpop.eup %505 }
 0x132   :  { %445 = vst.msk [vmem:[#allocation3] sm:$0x1] %vm444_vm2, %v506_v10 }
 0x133   :  { %518 = shalt.err (!%p515_p4)
}
 0x134   :  { %s519_s15 = scalar_lea.hbm %s769_s5, 16 }
 0x135   :  { %p520_p5 = scmp.ne.s32.totalorder %s769_s5, %s519_s15  ;;  %p523_p6 = scmp.lt.u32.totalorder %s519_s15, %s769_s5 }
 0x137   :  { %p525_p7 = pnand %p523_p6, %p520_p5 }
 0x139   :  { %528 = shalt.err (!%p525_p7)
}
 0x13a   :  { %455 = dma.vmem_to_hbm [thread:$0]  %s453_s11, 16, %s769_s5, [#allocation4]  }
 0x13b   :  { %529 = dma.done.wait [#allocation4], 16  }
 0x13c   :  { %530 = vsyncadd [#allocation4], 4294967280 }
 0x13d   :  { %459 = vsyncpa [#allocation4], 1 }

</bundles_post_ra>
